<compile_context>
chip_gen: v7x
topology: tpu7x:2x2x1
jax: 0.10.0
libtpu: 0.0.40
codegen_flags: <defaults>
</compile_context>

<pallas_src>
import jax
import jax.numpy as jnp
from jax.experimental import pallas as pl
from jax.experimental.pallas import tpu as pltpu


def _banded_conv_weights(w_hwio, W, C):
    """Fold the kw taps + horizontal 'same' zero padding of a 3x3 conv into three
    banded (W*C, W*C) matrices, one per kernel row kh:

        Wk[kh][(w+kw-1)*C + ci, w*C + co] = w_hwio[kh, kw, ci, co]   (0 <= w+kw-1 < W)

    so that  y[h, w*C + co] = sum_kh  x_padded[h+kh, :] @ Wk[kh].
    Built once in the wrapper (tiny: 3 x 64 x 64 f32 per conv)."""
    mats = []
    for kh in range(3):
        m = jnp.zeros((W * C, W * C), jnp.float32)
        for kw in range(3):
            # selector S[p, w] = 1  iff  p == w + kw - 1  (out-of-range taps drop out
            # of the eye -> horizontal zero padding is implicit)
            sel = jnp.eye(W, k=1 - kw, dtype=jnp.float32)
            m = m + jnp.kron(sel, w_hwio[kh, kw].astype(jnp.float32))
        mats.append(m)
    return jnp.stack(mats, axis=0)                      # (3, W*C, W*C)


def resblock_kernel(x_ref, wb1_ref, b1_ref, wb2_ref, b2_ref, o_ref, pad_ref):
    # x_ref / o_ref : (1, H, W*C)      one image per grid step, lane-dense slab
    # wb*_ref       : (3, W*C, W*C)    banded conv weights (kh-major)
    # b*_ref        : (1, W*C)         bias tiled across W
    # pad_ref       : VMEM (H+2, W*C)  f32 vertically padded working buffer
    _, H, WC = o_ref.shape

    x = x_ref[0].astype(jnp.float32)                    # (H, WC)

    # Zero only the two halo rows (horizontal padding lives in the banded weights).
    # Done every step: each TensorCore owns its own (uninitialized) scratch.
    zrow = jnp.zeros((1, WC), jnp.float32)
    pad_ref[0:1, :] = zrow
    pad_ref[H + 1:H + 2, :] = zrow

    def conv3x3(wb_ref, b_ref):
        # bias folded into the accumulator init; 3 MXU matmuls, statically unrolled
        acc = jnp.broadcast_to(b_ref[...].astype(jnp.float32), (H, WC))
        for kh in range(3):
            acc = acc + jnp.dot(pad_ref[kh:kh + H, :], wb_ref[kh],
                                preferred_element_type=jnp.float32)
        return acc

    # conv1 + ReLU  (vertical halo padding happens here, not in the wrapper)
    pad_ref[1:1 + H, :] = x
    h1 = jnp.maximum(conv3x3(wb1_ref, b1_ref), 0.0)

    # conv2 + residual add (reuse the scratch; halo rows are still zero)
    pad_ref[1:1 + H, :] = h1
    h2 = conv3x3(wb2_ref, b2_ref)

    o_ref[0] = (h2 + x).astype(o_ref.dtype)


def residual_block_flat(x_flat, w1, b1, w2, b2, *, W, C):
    """Lane-dense entry point.  x_flat: (N, H, W*C), channels packed per pixel."""
    N, H, WC = x_flat.shape
    assert WC == W * C

    wb1 = _banded_conv_weights(w1, W, C)
    wb2 = _banded_conv_weights(w2, W, C)
    b1_row = jnp.tile(b1.astype(jnp.float32), W).reshape(1, WC)
    b2_row = jnp.tile(b2.astype(jnp.float32), W).reshape(1, WC)

    return pl.pallas_call(
        resblock_kernel,
        out_shape=jax.ShapeDtypeStruct((N, H, WC), x_flat.dtype),
        grid_spec=pltpu.PrefetchScalarGridSpec(
            num_scalar_prefetch=0,
            grid=(N,),
            in_specs=[
                pl.BlockSpec((1, H, WC), lambda n: (n, 0, 0)),
                pl.BlockSpec((3, WC, WC), lambda n: (0, 0, 0)),
                pl.BlockSpec((1, WC), lambda n: (0, 0)),
                pl.BlockSpec((3, WC, WC), lambda n: (0, 0, 0)),
                pl.BlockSpec((1, WC), lambda n: (0, 0)),
            ],
            out_specs=pl.BlockSpec((1, H, WC), lambda n: (n, 0, 0)),
            scratch_shapes=[pltpu.VMEM((H + 2, WC), jnp.float32)],
        ),
        compiler_params=pltpu.CompilerParams(
            dimension_semantics=("parallel",)),          # batch is embarrassingly parallel
    )(x_flat, wb1, b1_row, wb2, b2_row)


def residual_block(x_nchw, w1, b1, w2, b2):
    """PyTorch-layout wrapper. x_nchw: (N, C, H, W). w*: (3,3,Cin,Cout) HWIO. b*: (C,)."""
    N, C, H, W = x_nchw.shape
    # TODO(synk): for production, accept/return the lane-dense (N, H, W*C) layout
    # directly (residual_block_flat) and drop this HBM round-trip relayout.
    x_flat = jnp.transpose(x_nchw, (0, 2, 3, 1)).reshape(N, H, W * C)
    out_flat = residual_block_flat(x_flat, w1, b1, w2, b2, W=W, C=C)
    return jnp.transpose(out_flat.reshape(N, H, W, C), (0, 3, 1, 2))


def reference_residual_block(x_nchw, w1, b1, w2, b2):
    """Pure-JAX reference (lax conv) for validation."""
    def conv(x, w, b):
        y = jax.lax.conv_general_dilated(
            x, w, window_strides=(1, 1), padding="SAME",
            dimension_numbers=("NCHW", "HWIO", "NCHW"))
        return y + b[None, :, None, None]
    h = jax.nn.relu(conv(x_nchw, w1, b1))
    return conv(h, w2, b2) + x_nchw


if __name__ == "__main__":
    num_features = 4
    N, C, H, W = 2, num_features, 16, 16

    key = jax.random.PRNGKey(0)
    kx, kw1, kb1, kw2, kb2 = jax.random.split(key, 5)

    x = jax.random.normal(kx, (N, C, H, W), dtype=jnp.float32)
    # deterministic synthetic parameters, stored directly as HWIO (3, 3, C_in, C_out)
    w1 = 0.1 * jax.random.normal(kw1, (3, 3, C, C), dtype=jnp.float32)
    b1 = 0.1 * jax.random.normal(kb1, (C,), dtype=jnp.float32)
    w2 = 0.1 * jax.random.normal(kw2, (3, 3, C, C), dtype=jnp.float32)
    b2 = 0.1 * jax.random.normal(kb2, (C,), dtype=jnp.float32)

    out = residual_block(x, w1, b1, w2, b2)
    out = jax.block_until_ready(out)

    ref = reference_residual_block(x, w1, b1, w2, b2)
    assert out.shape == (N, C, H, W)
    assert jnp.allclose(out, ref, atol=1e-4, rtol=1e-4), "mismatch vs reference"

    print("KERNEL_OK")
</pallas_src>

<mosaic_0001>
module attributes {stable_mosaic.version = 11 : i64} {
  func.func @resblock_kernel(%arg0: i32, %arg1: memref<1x16x64xf32, #tpu.memory_space<vmem>>, %arg2: memref<3x64x64xf32, #tpu.memory_space<vmem>>, %arg3: memref<1x64xf32, #tpu.memory_space<vmem>>, %arg4: memref<3x64x64xf32, #tpu.memory_space<vmem>>, %arg5: memref<1x64xf32, #tpu.memory_space<vmem>>, %arg6: memref<1x16x64xf32, #tpu.memory_space<vmem>>, %arg7: memref<18x64xf32, #tpu.memory_space<vmem>>) attributes {dimension_semantics = [#tpu.dimension_semantics<parallel>], iteration_bounds = array<i64: 2>, scalar_prefetch = 0 : i64, scratch_operands = 1 : i64, tpu.core_type = #tpu.core_type<tc>, window_params = [{transform_indices = @transform_0, window_bounds = array<i64: 1, 16, 64>}, {pipeline_mode = #tpu.pipeline_mode<synchronous>, transform_indices = @transform_1, window_bounds = array<i64: 3, 64, 64>}, {pipeline_mode = #tpu.pipeline_mode<synchronous>, transform_indices = @transform_2, window_bounds = array<i64: 1, 64>}, {pipeline_mode = #tpu.pipeline_mode<synchronous>, transform_indices = @transform_3, window_bounds = array<i64: 3, 64, 64>}, {pipeline_mode = #tpu.pipeline_mode<synchronous>, transform_indices = @transform_4, window_bounds = array<i64: 1, 64>}, {transform_indices = @transform_5, window_bounds = array<i64: 1, 16, 64>}]} {
    %c0 = arith.constant 0 : index
    %c0_0 = arith.constant 0 : index
    %c0_1 = arith.constant 0 : index
    %0 = vector.load %arg1[%c0, %c0_0, %c0_1] : memref<1x16x64xf32, #tpu.memory_space<vmem>>, vector<1x16x64xf32>
    %1 = vector.shape_cast %0 : vector<1x16x64xf32> to vector<16x64xf32>
    %cst = arith.constant 0.000000e+00 : f32
    %2 = vector.broadcast %cst : f32 to vector<1x64xf32>
    %c0_2 = arith.constant 0 : index
    %c0_3 = arith.constant 0 : index
    %3 = vector.load %arg7[%c0_2, %c0_3] : memref<18x64xf32, #tpu.memory_space<vmem>>, vector<1x64xf32>
    tpu.vector_store %arg7[%c0_2, %c0_3], %2 {strides = array<i32>} : memref<18x64xf32, #tpu.memory_space<vmem>>, vector<1x64xf32>,
    %c17 = arith.constant 17 : index
    %c0_4 = arith.constant 0 : index
    %4 = vector.load %arg7[%c17, %c0_4] : memref<18x64xf32, #tpu.memory_space<vmem>>, vector<1x64xf32>
    tpu.vector_store %arg7[%c17, %c0_4], %2 {strides = array<i32>} : memref<18x64xf32, #tpu.memory_space<vmem>>, vector<1x64xf32>,
    %c1 = arith.constant 1 : index
    %c0_5 = arith.constant 0 : index
    %5 = vector.load %arg7[%c1, %c0_5] : memref<18x64xf32, #tpu.memory_space<vmem>>, vector<16x64xf32>
    tpu.vector_store %arg7[%c1, %c0_5], %1 {strides = array<i32>} : memref<18x64xf32, #tpu.memory_space<vmem>>, vector<16x64xf32>,
    %c0_6 = arith.constant 0 : index
    %c0_7 = arith.constant 0 : index
    %6 = vector.load %arg3[%c0_6, %c0_7] : memref<1x64xf32, #tpu.memory_space<vmem>>, vector<1x64xf32>
    %7 = vector.shape_cast %6 : vector<1x64xf32> to vector<1x64xf32>
    %8 = vector.broadcast %7 : vector<1x64xf32> to vector<16x64xf32>
    %c0_8 = arith.constant 0 : index
    %c0_9 = arith.constant 0 : index
    %9 = vector.load %arg7[%c0_8, %c0_9] : memref<18x64xf32, #tpu.memory_space<vmem>>, vector<16x64xf32>
    %c0_10 = arith.constant 0 : index
    %c0_11 = arith.constant 0 : index
    %c0_12 = arith.constant 0 : index
    %10 = vector.load %arg2[%c0_10, %c0_11, %c0_12] : memref<3x64x64xf32, #tpu.memory_space<vmem>>, vector<1x64x64xf32>
    %11 = vector.shape_cast %10 : vector<1x64x64xf32> to vector<64x64xf32>
    %cst_13 = arith.constant dense<0.000000e+00> : vector<16x64xf32>
    %12 = tpu.matmul %9, %11, %cst_13 {dimension_numbers = #tpu.dot_dimension_numbers<[1], [0], [0], [1], [0, 0, 1, 1], [], []>} : vector<16x64xf32>, vector<64x64xf32>, vector<16x64xf32> -> vector<16x64xf32>
    %13 = arith.addf %8, %12 : vector<16x64xf32>
    %c1_14 = arith.constant 1 : index
    %c0_15 = arith.constant 0 : index
    %14 = vector.load %arg7[%c1_14, %c0_15] : memref<18x64xf32, #tpu.memory_space<vmem>>, vector<16x64xf32>
    %c1_16 = arith.constant 1 : index
    %c0_17 = arith.constant 0 : index
    %c0_18 = arith.constant 0 : index
    %15 = vector.load %arg2[%c1_16, %c0_17, %c0_18] : memref<3x64x64xf32, #tpu.memory_space<vmem>>, vector<1x64x64xf32>
    %16 = vector.shape_cast %15 : vector<1x64x64xf32> to vector<64x64xf32>
    %cst_19 = arith.constant dense<0.000000e+00> : vector<16x64xf32>
    %17 = tpu.matmul %14, %16, %cst_19 {dimension_numbers = #tpu.dot_dimension_numbers<[1], [0], [0], [1], [0, 0, 1, 1], [], []>} : vector<16x64xf32>, vector<64x64xf32>, vector<16x64xf32> -> vector<16x64xf32>
    %18 = arith.addf %13, %17 : vector<16x64xf32>
    %c2 = arith.constant 2 : index
    %c0_20 = arith.constant 0 : index
    %19 = vector.load %arg7[%c2, %c0_20] : memref<18x64xf32, #tpu.memory_space<vmem>>, vector<16x64xf32>
    %c2_21 = arith.constant 2 : index
    %c0_22 = arith.constant 0 : index
    %c0_23 = arith.constant 0 : index
    %20 = vector.load %arg2[%c2_21, %c0_22, %c0_23] : memref<3x64x64xf32, #tpu.memory_space<vmem>>, vector<1x64x64xf32>
    %21 = vector.shape_cast %20 : vector<1x64x64xf32> to vector<64x64xf32>
    %cst_24 = arith.constant dense<0.000000e+00> : vector<16x64xf32>
    %22 = tpu.matmul %19, %21, %cst_24 {dimension_numbers = #tpu.dot_dimension_numbers<[1], [0], [0], [1], [0, 0, 1, 1], [], []>} : vector<16x64xf32>, vector<64x64xf32>, vector<16x64xf32> -> vector<16x64xf32>
    %23 = arith.addf %18, %22 : vector<16x64xf32>
    %cst_25 = arith.constant 0.000000e+00 : f32
    %24 = vector.broadcast %cst_25 : f32 to vector<16x64xf32>
    %25 = arith.maximumf %23, %24 : vector<16x64xf32>
    %c1_26 = arith.constant 1 : index
    %c0_27 = arith.constant 0 : index
    %26 = vector.load %arg7[%c1_26, %c0_27] : memref<18x64xf32, #tpu.memory_space<vmem>>, vector<16x64xf32>
    tpu.vector_store %arg7[%c1_26, %c0_27], %25 {strides = array<i32>} : memref<18x64xf32, #tpu.memory_space<vmem>>, vector<16x64xf32>,
    %c0_28 = arith.constant 0 : index
    %c0_29 = arith.constant 0 : index
    %27 = vector.load %arg5[%c0_28, %c0_29] : memref<1x64xf32, #tpu.memory_space<vmem>>, vector<1x64xf32>
    %28 = vector.shape_cast %27 : vector<1x64xf32> to vector<1x64xf32>
    %29 = vector.broadcast %28 : vector<1x64xf32> to vector<16x64xf32>
    %c0_30 = arith.constant 0 : index
    %c0_31 = arith.constant 0 : index
    %30 = vector.load %arg7[%c0_30, %c0_31] : memref<18x64xf32, #tpu.memory_space<vmem>>, vector<16x64xf32>
    %c0_32 = arith.constant 0 : index
    %c0_33 = arith.constant 0 : index
    %c0_34 = arith.constant 0 : index
    %31 = vector.load %arg4[%c0_32, %c0_33, %c0_34] : memref<3x64x64xf32, #tpu.memory_space<vmem>>, vector<1x64x64xf32>
    %32 = vector.shape_cast %31 : vector<1x64x64xf32> to vector<64x64xf32>
    %cst_35 = arith.constant dense<0.000000e+00> : vector<16x64xf32>
    %33 = tpu.matmul %30, %32, %cst_35 {dimension_numbers = #tpu.dot_dimension_numbers<[1], [0], [0], [1], [0, 0, 1, 1], [], []>} : vector<16x64xf32>, vector<64x64xf32>, vector<16x64xf32> -> vector<16x64xf32>
    %34 = arith.addf %29, %33 : vector<16x64xf32>
    %c1_36 = arith.constant 1 : index
    %c0_37 = arith.constant 0 : index
    %35 = vector.load %arg7[%c1_36, %c0_37] : memref<18x64xf32, #tpu.memory_space<vmem>>, vector<16x64xf32>
    %c1_38 = arith.constant 1 : index
    %c0_39 = arith.constant 0 : index
    %c0_40 = arith.constant 0 : index
    %36 = vector.load %arg4[%c1_38, %c0_39, %c0_40] : memref<3x64x64xf32, #tpu.memory_space<vmem>>, vector<1x64x64xf32>
    %37 = vector.shape_cast %36 : vector<1x64x64xf32> to vector<64x64xf32>
    %cst_41 = arith.constant dense<0.000000e+00> : vector<16x64xf32>
    %38 = tpu.matmul %35, %37, %cst_41 {dimension_numbers = #tpu.dot_dimension_numbers<[1], [0], [0], [1], [0, 0, 1, 1], [], []>} : vector<16x64xf32>, vector<64x64xf32>, vector<16x64xf32> -> vector<16x64xf32>
    %39 = arith.addf %34, %38 : vector<16x64xf32>
    %c2_42 = arith.constant 2 : index
    %c0_43 = arith.constant 0 : index
    %40 = vector.load %arg7[%c2_42, %c0_43] : memref<18x64xf32, #tpu.memory_space<vmem>>, vector<16x64xf32>
    %c2_44 = arith.constant 2 : index
    %c0_45 = arith.constant 0 : index
    %c0_46 = arith.constant 0 : index
    %41 = vector.load %arg4[%c2_44, %c0_45, %c0_46] : memref<3x64x64xf32, #tpu.memory_space<vmem>>, vector<1x64x64xf32>
    %42 = vector.shape_cast %41 : vector<1x64x64xf32> to vector<64x64xf32>
    %cst_47 = arith.constant dense<0.000000e+00> : vector<16x64xf32>
    %43 = tpu.matmul %40, %42, %cst_47 {dimension_numbers = #tpu.dot_dimension_numbers<[1], [0], [0], [1], [0, 0, 1, 1], [], []>} : vector<16x64xf32>, vector<64x64xf32>, vector<16x64xf32> -> vector<16x64xf32>
    %44 = arith.addf %39, %43 : vector<16x64xf32>
    %45 = arith.addf %44, %1 : vector<16x64xf32>
    %c0_48 = arith.constant 0 : index
    %c0_49 = arith.constant 0 : index
    %c0_50 = arith.constant 0 : index
    %46 = vector.load %arg6[%c0_48, %c0_49, %c0_50] : memref<1x16x64xf32, #tpu.memory_space<vmem>>, vector<1x16x64xf32>
    %47 = vector.shape_cast %46 : vector<1x16x64xf32> to vector<16x64xf32>
    %48 = vector.shape_cast %45 : vector<16x64xf32> to vector<1x16x64xf32>
    tpu.vector_store %arg6[%c0_48, %c0_49, %c0_50], %48 {strides = array<i32>} : memref<1x16x64xf32, #tpu.memory_space<vmem>>, vector<1x16x64xf32>,
    return
  }
  func.func @transform_0(%arg0: i32) -> (i32, i32, i32) {
    %c0_i32 = arith.constant 0 : i32
    %c0_i32_0 = arith.constant 0 : i32
    %c0_i32_1 = arith.constant 0 : i32
    return %arg0, %c0_i32, %c0_i32_0 : i32, i32, i32
  }
  func.func @transform_1(%arg0: i32) -> (i32, i32, i32) {
    %c0_i32 = arith.constant 0 : i32
    %c0_i32_0 = arith.constant 0 : i32
    %c0_i32_1 = arith.constant 0 : i32
    %c0_i32_2 = arith.constant 0 : i32
    return %c0_i32, %c0_i32_0, %c0_i32_1 : i32, i32, i32
  }
  func.func @transform_2(%arg0: i32) -> (i32, i32) {
    %c0_i32 = arith.constant 0 : i32
    %c0_i32_0 = arith.constant 0 : i32
    %c0_i32_1 = arith.constant 0 : i32
    return %c0_i32, %c0_i32_0 : i32, i32
  }
  func.func @transform_3(%arg0: i32) -> (i32, i32, i32) {
    %c0_i32 = arith.constant 0 : i32
    %c0_i32_0 = arith.constant 0 : i32
    %c0_i32_1 = arith.constant 0 : i32
    %c0_i32_2 = arith.constant 0 : i32
    return %c0_i32, %c0_i32_0, %c0_i32_1 : i32, i32, i32
  }
  func.func @transform_4(%arg0: i32) -> (i32, i32) {
    %c0_i32 = arith.constant 0 : i32
    %c0_i32_0 = arith.constant 0 : i32
    %c0_i32_1 = arith.constant 0 : i32
    return %c0_i32, %c0_i32_0 : i32, i32
  }
  func.func @transform_5(%arg0: i32) -> (i32, i32, i32) {
    %c0_i32 = arith.constant 0 : i32
    %c0_i32_0 = arith.constant 0 : i32
    %c0_i32_1 = arith.constant 0 : i32
    return %arg0, %c0_i32, %c0_i32_0 : i32, i32, i32
  }
}

</mosaic_0001>

<bundles_post_ra>
// kernel: tpu_custom_call.1
= control target key start
LH: loop header
LB: loop body
LE: loop exit
PB: predicated region body
PF: predicated region fallthrough
CT: control target
= control target key end

     0   :  { %10 = vsyncpa [#allocation4], 0  ;;  %s1834_s0 = inlined_call_operand.hbm [shape: f32[2,16,64], index: 0, kind: input, shape index: {}]   ;;  %s1835_s1 = inlined_call_operand.hbm [shape: f32[3,64,64], index: 1, kind: input, shape index: {}]   ;;  %s1836_s2 = inlined_call_operand.vmem [shape: f32[1,64], index: 2, kind: input, shape index: {}]   ;;  %s1837_s3 = inlined_call_operand.hbm [shape: f32[3,64,64], index: 3, kind: input, shape index: {}]   ;;  %s1838_s4 = inlined_call_operand.vmem [shape: f32[1,64], index: 4, kind: input, shape index: {}]   ;;  %s1839_s5 = inlined_call_operand.hbm [shape: f32[2,16,64], index: 5, kind: output, shape index: {}]  }
   0x1   :  { %12 = vsyncpa [#allocation4 + $0x1], 0 }
   0x2   :  { %13 = vsyncpa [#allocation7], 0 }
   0x3   :  { %14 = vsyncpa [#allocation5], 0 }
   0x4   :  { %16 = vsyncpa [#allocation5 + $0x1], 0  ;;  %s1555_s18 = smov 0   ;;  %s1557_s19 = smov 0  }
   0x5   :  { %s1559_s20 = smov 0   ;;  %s1561_s21 = smov 0  }
   0x6 LB: > { %s1576_s22 = sadd.s32 4294967295, %s1514_s21   ;;  %s970_s23 = sadd.s32 4294967294, %s1514_s21   ;;  %s1514_s21 = sphi %s1561_s21, %s1859_s21   ;;  %s1510_s20 = sphi %s1559_s20, %s1858_s20   ;;  %s1506_s19 = sphi %s1557_s19, %s1857_s19   ;;  %s1502_s18 = sphi %s1555_s18, %s1856_s18  }
   0x7   : > { %p42_p0 = scmp.ne.s32.totalorder %s1506_s19, %s1502_s18  ;;  %p1840_p1 = scmp.eq.s32.totalorder %s1576_s22, 0 }
   0x8   : > { %p156_p3 = scmp.eq.s32.totalorder %s970_s23, 1  ;;  %p971_p5 = scmp.ge.s32.totalorder %s1514_s21, 1 }
   0x9   : > { %p1585_p4 = por %p1840_p1, %p42_p0  ;;  %p163_p7 = scmp.lt.s32.totalorder %s1514_s21, 3 }
   0xa   : > { %p1590_p6 = por %p156_p3, %p42_p0  ;;  %s1516_s27 = smov [#allocation6]  }
   0xb   : > { %s1843_s24 = scalar_select %p1585_p4, 1, 0 }
   0xc   : > { %s1844_s25 = scalar_select %p1590_p6, 1, 0 }
   0xd   : > { %p1595_p8 = pnand %p971_p5, %p163_p7  ;;  %s175_s28 = sshll.u32 %s1516_s27, 4  ;;  %s1599_s28 = int_to_ptr.vmem [resolvable:$true] %s175_s28 }
   0xe   : > { %s1517_s30 = smov [#allocation8]   ;;  %s1358_s9 = scalar_lea.hbm %s1835_s1, 3072 }
   0xf   : > { %p1298_p9 = pneg %p1595_p8  ;;  %s191_s6 = sshll.u32 %s1517_s30, 4  ;;  %s1610_s6 = int_to_ptr.vmem [resolvable:$true] %s191_s6 }
  0x10   : > { %p1359_p12 = scmp.ne.s32.totalorder %s1835_s1, %s1358_s9  ;;  %p1365_p5 = scmp.lt.u32.totalorder %s1358_s9, %s1835_s1 }
  0x11   : > { %p1606_p11 = pnand %p1298_p9, %p1840_p1 }
  0x13   : > { %p1360_p13 = pneg %p1606_p11 }
  0x15   : > { %p1361_p0 = pnand %p1360_p13, %p1359_p12 }
  0x17   : > { %p1362_p3 = pneg %p1361_p0 }
  0x19   : > { %p1367_p7 = pnand %p1365_p5, %p1362_p3 }
  0x1b   : > { %1370 = shalt.err (!%p1367_p7)
}
  0x1c   : > { %s1371_s14 = scalar_lea.vmem %s1599_s28, 3072  ;;  %p1379_p2 = scmp.lt.s32.totalorder %s1599_s28, %s1599_s28 }
  0x1d   : > { %p1372_p9 = scmp.ne.s32.totalorder %s1599_s28, %s1371_s14  ;;  %p1380_p12 = scmp.lt.s32.totalorder %s1371_s14, %s1371_s14 }
  0x1f   : > { %p1374_p10 = pnand %p1372_p9, %p1360_p13  ;;  %p1381_p0 = por %p1380_p12, %p1379_p2 }
  0x21   : > { %p1375_p1 = pneg %p1374_p10 }
  0x23   : > { %p1382_p6 = pnand %p1381_p0, %p1375_p1 }
  0x25   : > { %1385 = shalt.err (!%p1382_p6)
}
  0x26   : > { %s1518_s15 = smov 128   ;;  %s1519_s16 = smov 8  }
  0x27   : > { %1301 = dma.hbm_to_vmem [thread:$0]  (!%p1606_p11), %s1835_s1, 3072, %s1599_s28, [#allocation7], %s1518_s15, %s1518_s15, %s1519_s16  }
  0x28   : > { %s1386_s7 = scalar_lea.hbm %s1837_s3, 3072 }
  0x29   : > { %p1387_p1 = scmp.ne.s32.totalorder %s1837_s3, %s1386_s7  ;;  %p1393_p10 = scmp.lt.u32.totalorder %s1386_s7, %s1837_s3 }
  0x2b   : > { %p1389_p2 = pnand %p1387_p1, %p1360_p13 }
  0x2d   : > { %p1390_p6 = pneg %p1389_p2 }
  0x2f   : > { %p1395_p3 = pnand %p1393_p10, %p1390_p6 }
  0x31   : > { %1398 = shalt.err (!%p1395_p3)
}
  0x32   : > { %s1399_s28 = scalar_lea.vmem %s1610_s6, 3072  ;;  %p1407_p12 = scmp.lt.s32.totalorder %s1610_s6, %s1610_s6 }
  0x33   : > { %p1400_p5 = scmp.ne.s32.totalorder %s1610_s6, %s1399_s28  ;;  %p1408_p0 = scmp.lt.s32.totalorder %s1399_s28, %s1399_s28 }
  0x35   : > { %p1402_p7 = pnand %p1400_p5, %p1360_p13  ;;  %p1409_p1 = por %p1408_p0, %p1407_p12 }
  0x37   : > { %p1403_p9 = pneg %p1402_p7 }
  0x39   : > { %p1410_p2 = pnand %p1409_p1, %p1403_p9 }
  0x3b   : > { %1413 = shalt.err (!%p1410_p2)
}
  0x3c   : > { %1304 = dma.hbm_to_vmem [thread:$0]  (!%p1606_p11), %s1837_s3, 3072, %s1610_s6, [#allocation7], %s1518_s15, %s1518_s15, %s1519_s16  }
  0x3d   : > { %s1671_s29 = sadd.s32 1, %s1514_s21   ;;  %s29_s14 = sadd.s32 1, %s1510_s20 }
  0x3e   : > { %s26_s17 = ssub.s32 %s1514_s21, %s1671_s29  ;;  %p36_p13 = scmp.ne.s32.totalorder %s1510_s20, %s1506_s19 }
  0x3f   : > { %p27_p6 = scmp.eq.s32.totalorder %s26_s17, 0  ;;  %p37_p10 = scmp.eq.s32.totalorder %s1514_s21, 0 }
  0x40   : > { %p1847_p3 = scmp.eq.s32.totalorder %s1576_s22, 1  ;;  %p1315_p7 = scmp.lt.s32.totalorder %s1514_s21, 2 }
  0x41   : > { %s1687_s27 = scalar_select %p27_p6, %s1510_s20, %s29_s14  }
  0x42   : > { %p1681_p5 = por %p1847_p3, %p36_p13  ;;  %p38_p9 = por %p37_p10, %p36_p13 }
  0x43   : > { %s208_s30 = sand.u32 1, %s1510_s20   ;;  %s1002_s6 = sshll.u32 %s1514_s21, 8 }
  0x44   : > { %s1848_s23 = scalar_select %p1681_p5, 1, 0 }
  0x45   : > { %s975_s7 = sshll.u32 %s208_s30, 4  ;;  %s1694_s10 = scalar_lea.hbm %s1834_s0, %s1002_s6 }
  0x46   : > { %s212_s11 = scalar_lea.vmem [#allocation3], %s975_s7  ;;  %p1698_p11 = pnand %p1315_p7, %p38_p9 }
  0x47   : > { %s219_s28 = sshll.u32 %s212_s11, 4  ;;  %s1702_s13 = scalar_lea.sflag [#allocation4], %s208_s30  ;;  %s1696_s28 = int_to_ptr.vmem [resolvable:$true] %s219_s28 }
  0x48   : > { %s1414_s14 = scalar_lea.hbm %s1694_s10, 256  ;;  %p1416_p0 = pneg %p1698_p11 }
  0x49   : > { %p1415_p12 = scmp.ne.s32.totalorder %s1694_s10, %s1414_s14  ;;  %s1419_s6 = scalar_lea.hbm %s1834_s0, 512 }
  0x4a   : > { %p1420_p13 = scmp.lt.u32.totalorder %s1694_s10, %s1834_s0  ;;  %p1421_p6 = scmp.lt.u32.totalorder %s1419_s6, %s1414_s14 }
  0x4b   : > { %p1417_p1 = pnand %p1416_p0, %p1415_p12  ;;  %p1423_p3 = scmp.lt.u32.totalorder %s1414_s14, %s1694_s10 }
  0x4c   : > { %p1422_p10 = por %p1421_p6, %p1420_p13 }
  0x4d   : > { %p1418_p2 = pneg %p1417_p1 }
  0x4e   : > { %p1424_p7 = por %p1423_p3, %p1422_p10 }
  0x50   : > { %p1425_p9 = pnand %p1424_p7, %p1418_p2 }
  0x52   : > { %1428 = shalt.err (!%p1425_p9)
}
  0x53   : > { %s1429_s30 = scalar_lea.vmem %s1696_s28, 256  ;;  %s1520_s11 = smov [#allocation3]  }
  0x54   : > { %p1430_p12 = scmp.ne.s32.totalorder %s1696_s28, %s1429_s30  ;;  %s1434_s17 = sshll.u32 %s1520_s11, 4  ;;  %s1435_s17 = int_to_ptr.vmem [resolvable:$false] %s1434_s17 }
  0x55   : > { %s1436_s7 = scalar_lea.vmem %s1435_s17, 512  ;;  %p1437_p4 = scmp.lt.s32.totalorder %s1696_s28, %s1435_s17 }
  0x56   : > { %p1432_p1 = pnand %p1430_p12, %p1416_p0  ;;  %p1438_p13 = scmp.lt.s32.totalorder %s1436_s7, %s1429_s30 }
  0x58   : > { %p1433_p5 = pneg %p1432_p1  ;;  %p1439_p6 = por %p1438_p13, %p1437_p4 }
  0x5a   : > { %p1440_p10 = pnand %p1439_p6, %p1433_p5 }
  0x5c   : > { %1443 = shalt.err (!%p1440_p10)
}
  0x5d   : > { %1308 = dma.hbm_to_vmem [thread:$0]  (!%p1698_p11), %s1694_s10, 256, %s1696_s28, %s1702_s13, %s1518_s15, %s1518_s15, %s1519_s16  }
  0x5e   : > { %231 = sbr.rel (%p1595_p8) target bundleno = 646 (0x286), region = 40  ;;  %s1736_s14 = sand.u32 (!%p1595_p8), 1, %s1506_s19  }
  0x5f   : > { %s979_s6 = sshll.u32 (!%p1595_p8), %s1736_s14, 4  ;;  %s234_s8 = scalar_lea.sflag (!%p1595_p8), [#allocation4], %s1736_s14 }
  0x60   : > { %s237_s12 = scalar_lea.vmem (!%p1595_p8), [#allocation3], %s979_s6  ;;  %p1850_p4 = scmp.ne.s32.totalorder (!%p1595_p8), %s1843_s24, 0 }
  0x65   : > { %1489 = dma.done.wait (%p1850_p4), %s234_s8, 256  }
  0x66   : > { %1491 = vsyncadd (%p1850_p4), %s234_s8, 4294967040  ;;  %p1851_p5 = scmp.eq.s32.totalorder %s1576_s22, 0 }
  0x68   : > { %1493 = dma.done.wait (%p1851_p5), [#allocation7], 6144   ;;  %p1852_p8 = pmov %p1851_p5 }
  0x69   : > { %vm274_vm0 = vcmask 516096   ;;  %v1521_v0 = vmov 0.0   ;;  %v289_v1 = vld [vmem:[#allocation6] sm:$0xff]  ;;  %v290_v2 = vld [vmem:[#allocation6 + $0x8] sm:$0xff]  ;;  %v291_v3 = vld [vmem:[#allocation6 + $0x10] sm:$0xff]  ;;  %vm277_vm1 = vcmask 523264  }
  0x6a   : > { %1495 = vsyncadd (%p1852_p8), [#allocation7], 4294961152  ;;  %275 = vst.msk [vmem:[#allocation2] sm:$0x1] %vm274_vm0, %v1521_v0  ;;  %v1178_v4 = vpack.c.bf16 %v290_v2, %v289_v1  ;;  %v292_v5 = vld [vmem:[#allocation6 + $0x18] sm:$0xff]  ;;  %v293_v7 = vld [vmem:[#allocation6 + $0x20] sm:$0xff] }
  0x6b   : > { %276 = vst.msk [vmem:[#allocation2 + $0x11] sm:$0x1] %vm274_vm0, %v1521_v0  ;;  %v1182_v6 = vpack.c.bf16 %v292_v5, %v291_v3  ;;  %v294_v8 = vld [vmem:[#allocation6 + $0x28] sm:$0xff]  ;;  %v1750_v9 = vld [vmem:[%s237_s12] sm:$0xff]  ;;  %v296_v13 = vld [vmem:[#allocation6 + $0x38] sm:$0xff]  ;;  %s1003_s10 = sshll.u32 %s1576_s22, 8 }
  0x6c   : > { %1179 = vmatprep.subr.bf16.mxu0 %v1178_v4  ;;  %278 = vst.msk [vmem:[#allocation2 + $0x1] sm:$0xff] %vm277_vm1, %v1750_v9  ;;  %v1754_v10 = vld [vmem:[%s237_s12 + $0x8] sm:$0xff]  ;;  %v1186_v11 = vpack.c.bf16 %v294_v8, %v293_v7  ;;  %v295_v12 = vld [vmem:[#allocation6 + $0x30] sm:$0xff]  ;;  %v581_v14 = vld [vmem:[#allocation8] sm:$0xff]  ;;  %s271_s28 = scalar_lea.vmem [#allocation9], %s979_s6  ;;  %s1785_s11 = scalar_lea.hbm %s1839_s5, %s1003_s10 }
  0x6d   : > { %1181 = vmatpush3.bf16.msra.mxu0 %v1178_v4  ;;  %279 = vst.msk [vmem:[#allocation2 + $0x9] sm:$0xff] %vm277_vm1, %v1754_v10  ;;  %v1190_v15 = vpack.c.bf16 %v296_v13, %v295_v12  ;;  %v582_v16 = vld [vmem:[#allocation8 + $0x8] sm:$0xff]  ;;  %v383_v18 = vld [vmem:[#allocation6 + $0x40] sm:$0xff]  ;;  %v385_v22 = vld [vmem:[#allocation6 + $0x50] sm:$0xff]  ;;  %s878_s13 = sshll.u32 %s271_s28, 4  ;;  %s865_s22 = scalar_lea.sflag [#allocation5], %s1736_s14  ;;  %s1787_s13 = int_to_ptr.vmem [resolvable:$true] %s878_s13 }
  0x6e   : > { %1183 = vmatprep.subr.bf16.mxu0 %v1182_v6  ;;  %v384_v19 = vld [vmem:[#allocation6 + $0x48] sm:$0xff]  ;;  %v1226_v20 = vpack.c.bf16 %v582_v16, %v581_v14  ;;  %v386_v23 = vld [vmem:[#allocation6 + $0x58] sm:$0xff]  ;;  %v387_v27 = vld [vmem:[#allocation6 + $0x60] sm:$0xff]  ;;  %s1444_s17 = scalar_lea.vmem %s1787_s13, 256  ;;  %p1853_p0 = scmp.ne.s32.totalorder %s1848_s23, 0 }
  0x6f   : > { %v1194_v21 = vpack.c.bf16 %v384_v19, %v383_v18  ;;  %v1198_v25 = vpack.c.bf16 %v386_v23, %v385_v22  ;;  %v388_v28 = vld [vmem:[#allocation6 + $0x68] sm:$0xff]  ;;  %v389_v30 = vld [vmem:[#allocation6 + $0x70] sm:$0xff]  ;;  %v390_v31 = vld [vmem:[#allocation6 + $0x78] sm:$0xff]  ;;  %p1445_p11 = scmp.ne.s32.totalorder %s1787_s13, %s1444_s17  ;;  %s1522_s7 = smov [#allocation9]  }
  0x70   : > { %1227 = vmatprep.subr.bf16.mxu1 %v1226_v20  ;;  %v1202_v29 = vpack.c.bf16 %v388_v28, %v387_v27  ;;  %v1206_v32 = vpack.c.bf16 %v390_v31, %v389_v30  ;;  %v477_v33 = vld [vmem:[#allocation6 + $0x80] sm:$0xff]  ;;  %v478_v34 = vld [vmem:[#allocation6 + $0x88] sm:$0xff]  ;;  %v479_v36 = vld [vmem:[#allocation6 + $0x90] sm:$0xff]  ;;  %s1448_s6 = sshll.u32 %s1522_s7, 4  ;;  %s1449_s6 = int_to_ptr.vmem [resolvable:$false] %s1448_s6 }
  0x71   : > { %1185 = vmatpush3.bf16.msra.mxu0 %v1182_v6  ;;  %1229 = vmatpush3.bf16.msra.mxu1 %v1226_v20  ;;  %v1210_v35 = vpack.c.bf16 %v478_v34, %v477_v33  ;;  %v480_v37 = vld [vmem:[#allocation6 + $0x98] sm:$0xff]  ;;  %v481_v41 = vld [vmem:[#allocation6 + $0xa0] sm:$0xff]  ;;  %v482_v42 = vld [vmem:[#allocation6 + $0xa8] sm:$0xff]  ;;  %p1446_p2 = pnand %p1445_p11, %p1853_p0  ;;  %s1450_s8 = scalar_lea.vmem %s1449_s6, 512 }
  0x72   : > { %1187 = vmatprep.subr.bf16.mxu0 %v1186_v11  ;;  %v1214_v39 = vpack.c.bf16 %v480_v37, %v479_v36  ;;  %v1218_v43 = vpack.c.bf16 %v482_v42, %v481_v41  ;;  %v483_v44 = vld [vmem:[#allocation6 + $0xb0] sm:$0xff]  ;;  %v484_v45 = vld [vmem:[#allocation6 + $0xb8] sm:$0xff]  ;;  %v585_v51 = vld [vmem:[#allocation8 + $0x20] sm:$0xff]  ;;  %p1451_p7 = scmp.lt.s32.totalorder %s1787_s13, %s1449_s6  ;;  %p1452_p9 = scmp.lt.s32.totalorder %s1450_s8, %s1444_s17 }
  0x73   : > { %v287_v17 = vld [vmem:[#allocation2] sm:$0xff]  ;;  %v1222_v46 = vpack.c.bf16 %v484_v45, %v483_v44  ;;  %v583_v48 = vld [vmem:[#allocation8 + $0x10] sm:$0xff]  ;;  %v584_v49 = vld [vmem:[#allocation8 + $0x18] sm:$0xff]  ;;  %p1447_p3 = pneg %p1446_p2 }
  0x74   : > { %1080 = vmatprep.mubr.msk.f32.mxu0 %vm277_vm1, %v287_v17  ;;  %v288_v24 = vld [vmem:[#allocation2 + $0x8] sm:$0xff]  ;;  %v1230_v50 = vpack.c.bf16 %v584_v49, %v583_v48  ;;  %v586_v52 = vld [vmem:[#allocation8 + $0x28] sm:$0xff]  ;;  %v588_v55 = vld [vmem:[#allocation8 + $0x38] sm:$0xff]  ;;  %p1453_p12 = por %p1452_p9, %p1451_p7 }
  0x75   : > { %1189 = vmatpush3.bf16.msra.mxu0 %v1186_v11  ;;  %v380_v26 = vld [vmem:[#allocation2 + $0x1] sm:$0xff]  ;;  %v381_v38 = vld [vmem:[#allocation2 + $0x9] sm:$0xff]  ;;  %v1234_v53 = vpack.c.bf16 %v586_v52, %v585_v51  ;;  %v675_v57 = vld [vmem:[#allocation8 + $0x40] sm:$0xff] }
  0x76   : > { %1191 = vmatprep.subr.bf16.mxu0 %v1190_v15  ;;  %v474_v40 = vld [vmem:[#allocation2 + $0x2] sm:$0xff]  ;;  %v475_v47 = vld [vmem:[#allocation2 + $0xa] sm:$0xff]  ;;  %1231 = vmatprep.subr.bf16.mxu1 %v1230_v50  ;;  %v983_v60 = vld [vmem:[%s1836_s2] ss:$0 sm:$0xff]  ;;  %p1454_p1 = pnand %p1453_p12, %p1447_p3 }
  0x77   : > { %1233 = vmatpush3.bf16.msra.mxu1 %v1230_v50  ;;  %v587_v54 = vld [vmem:[#allocation8 + $0x30] sm:$0xff]  ;;  %v676_v58 = vld [vmem:[#allocation8 + $0x48] sm:$0xff]  ;;  %v678_v4 = vld [vmem:[#allocation8 + $0x58] sm:$0xff] }
  0x78   : > { %1235 = vmatprep.subr.bf16.mxu1 %v1234_v53  ;;  %v1238_v56 = vpack.c.bf16 %v588_v55, %v587_v54  ;;  %v1242_v59 = vpack.c.bf16 %v676_v58, %v675_v57  ;;  %v677_v3 = vld [vmem:[#allocation8 + $0x50] sm:$0xff]  ;;  %v679_v8 = vld [vmem:[#allocation8 + $0x60] sm:$0xff]  ;;  %v680_v11 = vld [vmem:[#allocation8 + $0x68] sm:$0xff] }
  0x79   : > { %1193 = vmatpush3.bf16.msra.mxu0 %v1190_v15  ;;  %v1246_v7 = vpack.c.bf16 %v678_v4, %v677_v3  ;;  %v1250_v13 = vpack.c.bf16 %v680_v11, %v679_v8  ;;  %v681_v14 = vld [vmem:[#allocation8 + $0x70] sm:$0xff]  ;;  %v682_v15 = vld [vmem:[#allocation8 + $0x78] sm:$0xff]  ;;  %v769_v17 = vld [vmem:[#allocation8 + $0x80] sm:$0xff] }
  0x7a   : > { %1195 = vmatprep.subr.bf16.mxu0 %v1194_v21  ;;  %v1254_v16 = vpack.c.bf16 %v682_v15, %v681_v14  ;;  %v770_v18 = vld [vmem:[#allocation8 + $0x88] sm:$0xff]  ;;  %v771_v20 = vld [vmem:[#allocation8 + $0x90] sm:$0xff] }
  0x7b   : > { %1237 = vmatpush3.bf16.msra.mxu1 %v1234_v53  ;;  %v1258_v19 = vpack.c.bf16 %v770_v18, %v769_v17  ;;  %v775_v28 = vld [vmem:[#allocation8 + $0xb0] sm:$0xff] }
  0x7c   : > { %1081 = vmatmul.mubr.msk.f32.vlgmr.msra.gmra.mrb[0].mxu0 %vm277_vm1, %v288_v24  ;;  %1239 = vmatprep.subr.bf16.mxu1 %v1238_v56  ;;  %v773_v24 = vld [vmem:[#allocation8 + $0xa0] sm:$0xff] }
  0x7d   : > { %1197 = vmatpush3.bf16.msra.mxu0 %v1194_v21  ;;  %1099 = vmatprep.mubr.msk.f32.mxu0 %vm277_vm1, %v380_v26  ;;  %v772_v21 = vld [vmem:[#allocation8 + $0x98] sm:$0xff] }
  0x7e   : > { %1199 = vmatprep.subr.bf16.mxu0 %v1198_v25  ;;  %v1262_v22 = vpack.c.bf16 %v772_v21, %v771_v20 }
  0x7f   : > { %1241 = vmatpush3.bf16.msra.mxu1 %v1238_v56 }
  0x80   : > { %1243 = vmatprep.subr.bf16.mxu1 %v1242_v59 }
  0x81   : > { %1201 = vmatpush3.bf16.msra.mxu0 %v1198_v25  ;;  %v774_v25 = vld [vmem:[#allocation8 + $0xa8] sm:$0xff] }
  0x82   : > { %1203 = vmatprep.subr.bf16.mxu0 %v1202_v29  ;;  %v1266_v27 = vpack.c.bf16 %v774_v25, %v773_v24 }
  0x85   : > { %1205 = vmatpush3.bf16.msra.mxu0 %v1202_v29  ;;  %v776_v29 = vld [vmem:[#allocation8 + $0xb8] sm:$0xff] }
  0x86   : > { %1207 = vmatprep.subr.bf16.mxu0 %v1206_v32  ;;  %v1270_v30 = vpack.c.bf16 %v776_v29, %v775_v28 }
  0x89   : > { %1209 = vmatpush3.bf16.msra.mxu0 %v1206_v32  ;;  %v990_v32 = vld [vmem:[%s1838_s4] ss:$0 sm:$0xff] }
  0x8a   : > { %1211 = vmatprep.subr.bf16.mxu0 %v1210_v35 }
  0x8c   : > { %1100 = vmatmul.mubr.msk.f32.vlgmr.msra.gmra.mrb[0].mxu0 %vm277_vm1, %v381_v38 }
  0x8d   : > { %1213 = vmatpush3.bf16.msra.mxu0 %v1210_v35  ;;  %1118 = vmatprep.mubr.msk.f32.mxu0 %vm277_vm1, %v474_v40 }
  0x8e   : > { %1215 = vmatprep.subr.bf16.mxu0 %v1214_v39 }
  0x91   : > { %1217 = vmatpush3.bf16.msra.mxu0 %v1214_v39 }
  0x92   : > { %1219 = vmatprep.subr.bf16.mxu0 %v1218_v43 }
  0x95   : > { %1221 = vmatpush3.bf16.msra.mxu0 %v1218_v43 }
  0x96   : > { %1223 = vmatprep.subr.bf16.mxu0 %v1222_v46 }
  0x99   : > { %1225 = vmatpush3.bf16.msra.mxu0 %v1222_v46 }
  0x9c   : > { %1119 = vmatmul.mubr.msk.f32.vlgmr.msra.gmra.mrb[0].mxu0 %vm277_vm1, %v475_v47 }
 0x16f   : > { %v1120_v61 = vpop.f32.mrb[0].mxu0 }
 0x170   : > { %v1274_v62 = vadd.f32 %v1120_v61, %v983_v60  ;;  %v557_v63 = vpop.f32.mrb[1].mxu0 }
 0x171   : > { %v1275_v0 = vadd.f32 %v983_v60, %v557_v63 }
 0x172   : > { %v569_v1 = vmax.f32 %v1274_v62, 0.0 }
 0x173   : > { %v568_v2 = vmax.f32 %v1275_v0, 0.0 }
 0x174   : > { %571 = vst.msk [vmem:[#allocation2 + $0x9] sm:$0xff] %vm277_vm1, %v569_v1 }
 0x175   : > { %570 = vst.msk [vmem:[#allocation2 + $0x1] sm:$0xff] %vm277_vm1, %v568_v2 }
 0x17b   : > { %v673_v23 = vld [vmem:[#allocation2 + $0x9] sm:$0xff] }
 0x17c   : > { %v579_v5 = vld [vmem:[#allocation2] sm:$0xff]  ;;  %v580_v6 = vld [vmem:[#allocation2 + $0x8] sm:$0xff] }
 0x17d   : > { %1137 = vmatprep.mubr.msk.f32.mxu1 %vm277_vm1, %v579_v5  ;;  %v672_v12 = vld [vmem:[#allocation2 + $0x1] sm:$0xff]  ;;  %v767_v31 = vld [vmem:[#allocation2 + $0xa] sm:$0xff] }
 0x17e   : > { %1138 = vmatmul.mubr.msk.f32.vlgmr.msra.gmra.mrb[0].mxu1 %vm277_vm1, %v580_v6  ;;  %v766_v26 = vld [vmem:[#allocation2 + $0x2] sm:$0xff] }
 0x17f   : > { %1245 = vmatpush3.bf16.msra.mxu1 %v1242_v59  ;;  %1156 = vmatprep.mubr.msk.f32.mxu1 %vm277_vm1, %v672_v12 }
 0x180   : > { %1247 = vmatprep.subr.bf16.mxu1 %v1246_v7 }
 0x183   : > { %1249 = vmatpush3.bf16.msra.mxu1 %v1246_v7 }
 0x184   : > { %1251 = vmatprep.subr.bf16.mxu1 %v1250_v13 }
 0x187   : > { %1253 = vmatpush3.bf16.msra.mxu1 %v1250_v13 }
 0x188   : > { %1255 = vmatprep.subr.bf16.mxu1 %v1254_v16 }
 0x18b   : > { %1257 = vmatpush3.bf16.msra.mxu1 %v1254_v16 }
 0x18c   : > { %1259 = vmatprep.subr.bf16.mxu1 %v1258_v19 }
 0x18e   : > { %1157 = vmatmul.mubr.msk.f32.vlgmr.msra.gmra.mrb[0].mxu1 %vm277_vm1, %v673_v23 }
 0x18f   : > { %1261 = vmatpush3.bf16.msra.mxu1 %v1258_v19  ;;  %1175 = vmatprep.mubr.msk.f32.mxu1 %vm277_vm1, %v766_v26 }
 0x190   : > { %1263 = vmatprep.subr.bf16.mxu1 %v1262_v22 }
 0x193   : > { %1265 = vmatpush3.bf16.msra.mxu1 %v1262_v22 }
 0x194   : > { %1267 = vmatprep.subr.bf16.mxu1 %v1266_v27 }
 0x197   : > { %1269 = vmatpush3.bf16.msra.mxu1 %v1266_v27 }
 0x198   : > { %1271 = vmatprep.subr.bf16.mxu1 %v1270_v30 }
 0x19b   : > { %1273 = vmatpush3.bf16.msra.mxu1 %v1270_v30 }
 0x19e   : > { %1176 = vmatmul.mubr.msk.f32.vlgmr.msra.gmra.mrb[0].mxu1 %vm277_vm1, %v767_v31 }
 0x271   : > { %v1177_v33 = vpop.f32.mrb[0].mxu1 }
 0x272   : > { %v1276_v34 = vadd.f32 %v1177_v33, %v990_v32  ;;  %v849_v35 = vpop.f32.mrb[1].mxu1 }
 0x273   : > { %v1277_v36 = vadd.f32 %v990_v32, %v849_v35 }
 0x274   : > { %v861_v37 = vadd.f32 %v1276_v34, %v1754_v10 }
 0x275   : > { %v860_v38 = vadd.f32 %v1277_v36, %v1750_v9 }
 0x276   : > { %863 = vst.msk [vmem:[%s271_s28 + $0x8] sm:$0xff] %vm277_vm1, %v861_v37 }
 0x277   : > { %862 = vst.msk [vmem:[%s271_s28] sm:$0xff] %vm277_vm1, %v860_v38 }
 0x278   : > { %1457 = shalt.err (!%p1454_p1)
}
 0x279   : > { %s1458_s12 = scalar_lea.hbm %s1785_s11, 256  ;;  %s1462_s15 = scalar_lea.hbm %s1839_s5, 512 }
 0x27a   : > { %p1459_p13 = scmp.ne.s32.totalorder %s1785_s11, %s1458_s12  ;;  %p1463_p4 = scmp.lt.u32.totalorder %s1785_s11, %s1839_s5 }
 0x27b   : > { %p1464_p5 = scmp.lt.u32.totalorder %s1462_s15, %s1458_s12  ;;  %p1466_p11 = scmp.lt.u32.totalorder %s1458_s12, %s1785_s11 }
 0x27c   : > { %p1460_p6 = pnand %p1459_p13, %p1853_p0 }
 0x27d   : > { %p1465_p8 = por %p1464_p5, %p1463_p4 }
 0x27e   : > { %p1461_p10 = pneg %p1460_p6 }
 0x27f   : > { %p1467_p2 = por %p1466_p11, %p1465_p8 }
 0x281   : > { %p1468_p3 = pnand %p1467_p2, %p1461_p10 }
 0x283   : > { %1471 = shalt.err (!%p1468_p3)
}
 0x284   : > { %s1523_s28 = smov 128   ;;  %s1524_s9 = smov 8  }
 0x285   : > { %1296 = dma.vmem_to_hbm [thread:$0]  (%p1853_p0), %s1787_s13, 256, %s1785_s11, %s865_s22, %s1523_s28, %s1523_s28, %s1524_s9  }
 0x286 PF: > { %s893_s30 = sand.u32 1, %s1502_s18   ;;  %p1854_p7 = scmp.ne.s32.totalorder %s1844_s25, 0 }
 0x287   : > { %p1855_p9 = scmp.ge.s32.totalorder %s1514_s21, 2  ;;  %s894_s17 = scalar_lea.sflag [#allocation5], %s893_s30 }
 0x289   : > { %p1310_p12 = pnand %p1855_p9, %p1854_p7 }
 0x28b   : > { %1497 = dma.done.wait (!%p1310_p12), %s894_s17, 256  }
 0x28c   : > { %1499 = vsyncadd (!%p1310_p12), %s894_s17, 4294967040  ;;  %p19_p1 = scmp.ge.s32.totalorder %s1671_s29, 4   ;;  %s1856_s18 = smov %s1506_s19 }
 0x28d   : > { %s1857_s19 = smov %s1510_s20  ;;  %s1858_s20 = smov %s1687_s27 }
 0x28e   : > { %s1859_s21 = smov %s1671_s29  ;;  %21 = sbr.rel (!%p19_p1) target bundleno = 6 (0x6), region = 97 }
 0x295   :  { %899 = vsyncpa [#allocation4], 1 }
 0x296   :  { %901 = vsyncpa [#allocation4 + $0x1], 1 }
 0x297   :  { %902 = vsyncpa [#allocation7], 1 }
 0x298   :  { %903 = vsyncpa [#allocation5], 1 }
 0x299   :  { %905 = vsyncpa [#allocation5 + $0x1], 1 }

</bundles_post_ra>
